<compile_context>
chip_gen: v6e
topology: v6e:2x2x1
jax: 0.10.0
libtpu: 0.0.40
codegen_flags: <defaults>
</compile_context>

<pallas_src>
import functools

import jax
import jax.numpy as jnp
from jax.experimental import pallas as pl
from jax.experimental.pallas import tpu as pltpu

NEG_SLOPE = 0.01   # nn.LeakyReLU default negative_slope
BN_EPS = 1e-5      # nn.BatchNorm2d default eps


# ----------------------------- Pallas kernels ------------------------------ #

def _conv_stage_kernel(x_ref, scale_ref, shift_ref, w_ref,
                       y_ref, sum_ref, sq_ref, xp_ref,
                       *, Nb, H, W, Cin, Cout, fuse_act):
    """One 3x3 conv stage for Nb batch elements, lane-dense layout.

    x_ref:     (Nb, H, W*Cin)      f32 activations (lane index = w*Cin + ci)
    scale_ref: (1, W*Cin)          f32 folded BN scale of the previous stage
    shift_ref: (1, W*Cin)          f32 folded BN shift of the previous stage
    w_ref:     (3, W*Cin, W*Cout)  bf16 banded conv weight (one K x N matrix per dy)
    y_ref:     (Nb, H, W*Cout)     f32 conv output (pre-BN), lane-dense
    sum_ref:   (1, 1, W*Cout)      f32 lane-dense partial per-(w, cout) sum
    sq_ref:    (1, 1, W*Cout)      f32 lane-dense partial sum of squares
    xp_ref:    VMEM (Nb, H+2, W*Cin) f32 scratch: row-padded tile (no lane padding)
    """
    K = W * Cin
    a = x_ref[...]                                           # (Nb, H, W*Cin)
    if fuse_act:
        # Fused BatchNorm (folded scale/shift) + LeakyReLU of the previous stage.
        a = a * scale_ref[...] + shift_ref[...]
        a = jnp.maximum(a, NEG_SLOPE * a)                    # single VPU max

    # Row-padded tile.  Only the two halo rows are (re)zeroed each step (cheap
    # and safe under megacore grid sharding); the interior is fully overwritten.
    # Out-of-range dx taps are simply absent from the banded weight, so there is
    # no lane padding and the interior store starts at lane 0 (unmasked).
    xp_ref[:, 0:1, :] = jnp.zeros((Nb, 1, K), jnp.float32)
    xp_ref[:, H + 1:H + 2, :] = jnp.zeros((Nb, 1, K), jnp.float32)
    xp_ref[:, 1:H + 1, :] = a

    # Three accumulating MXU matmuls (one per dy tap): M = Nb*H rows,
    # bf16 operands, f32 accumulation.  No lane-axis concatenation.
    acc = None
    for dy in range(3):
        lhs = xp_ref[:, dy:dy + H, :].reshape(Nb * H, K).astype(jnp.bfloat16)
        part = jnp.dot(lhs, w_ref[dy], preferred_element_type=jnp.float32)
        acc = part if acc is None else acc + part            # (Nb*H, W*Cout)

    y_ref[...] = acc.reshape(Nb, H, W * Cout)                # lane-dense store

    # Partial BatchNorm statistics: reduce over rows (sublanes) only, keeping
    # the outputs lane-dense; the W -> Cout fold is done in XLA on a tiny array.
    sum_ref[0] = jnp.sum(acc, axis=0, keepdims=True)         # (1, W*Cout)
    sq_ref[0] = jnp.sum(acc * acc, axis=0, keepdims=True)


def _bn_lrelu_kernel(y_ref, scale_ref, shift_ref, o_ref):
    """Folded BatchNorm affine + LeakyReLU on a lane-dense (Nb, H, W*C) block."""
    z = y_ref[...] * scale_ref[...] + shift_ref[...]
    o_ref[...] = jnp.maximum(z, NEG_SLOPE * z)


# --------------------------- pallas_call wrappers --------------------------- #

def _pick_batch_block(N, H, target_rows=256):
    """Batch elements per grid step: fill the MXU (M = Nb*H >= target_rows where
    the batch allows) while keeping Nb a divisor of N."""
    nb = min(N, max(1, target_rows // max(H, 1)))
    while N % nb:
        nb -= 1
    return nb


def conv_stage(x_flat, scale_flat, shift_flat, w_band, *, Nb, H, W, Cin, Cout,
               fuse_act):
    N = x_flat.shape[0]
    G = N // Nb
    kern = functools.partial(_conv_stage_kernel, Nb=Nb, H=H, W=W, Cin=Cin,
                             Cout=Cout, fuse_act=fuse_act)
    return pl.pallas_call(
        kern,
        out_shape=(
            jax.ShapeDtypeStruct((N, H, W * Cout), jnp.float32),   # conv output
            jax.ShapeDtypeStruct((G, 1, W * Cout), jnp.float32),   # partial sums
            jax.ShapeDtypeStruct((G, 1, W * Cout), jnp.float32),   # partial sumsq
        ),
        grid_spec=pltpu.PrefetchScalarGridSpec(
            num_scalar_prefetch=0,
            grid=(G,),
            in_specs=[
                pl.BlockSpec((Nb, H, W * Cin), lambda g: (g, 0, 0)),
                pl.BlockSpec((1, W * Cin), lambda g: (0, 0)),
                pl.BlockSpec((1, W * Cin), lambda g: (0, 0)),
                pl.BlockSpec((3, W * Cin, W * Cout), lambda g: (0, 0, 0)),
            ],
            out_specs=(
                pl.BlockSpec((Nb, H, W * Cout), lambda g: (g, 0, 0)),
                pl.BlockSpec((1, 1, W * Cout), lambda g: (g, 0, 0)),
                pl.BlockSpec((1, 1, W * Cout), lambda g: (g, 0, 0)),
            ),
            scratch_shapes=[pltpu.VMEM((Nb, H + 2, W * Cin), jnp.float32)],
        ),
        compiler_params=pltpu.CompilerParams(dimension_semantics=("parallel",)),
    )(x_flat, scale_flat, shift_flat, w_band)


def bn_lrelu(y_flat, scale_flat, shift_flat, *, Nb):
    N, H, WC = y_flat.shape
    G = N // Nb
    return pl.pallas_call(
        _bn_lrelu_kernel,
        out_shape=jax.ShapeDtypeStruct((N, H, WC), jnp.float32),
        grid_spec=pltpu.PrefetchScalarGridSpec(
            num_scalar_prefetch=0,
            grid=(G,),
            in_specs=[
                pl.BlockSpec((Nb, H, WC), lambda g: (g, 0, 0)),
                pl.BlockSpec((1, WC), lambda g: (0, 0)),
                pl.BlockSpec((1, WC), lambda g: (0, 0)),
            ],
            out_specs=pl.BlockSpec((Nb, H, WC), lambda g: (g, 0, 0)),
        ),
        compiler_params=pltpu.CompilerParams(dimension_semantics=("parallel",)),
    )(y_flat, scale_flat, shift_flat)


# ------------------------------- JAX glue ----------------------------------- #

def conv_weight_to_banded(w_hwio, W, dtype=jnp.bfloat16):
    """(3, 3, Cin, Cout) HWIO conv weight -> (3, W*Cin, W*Cout) banded matrices
    (one per dy tap) acting on lane-dense unpadded rows (lane = w*Cin + ci).
    Out-of-range dx taps (conv zero padding) are simply omitted, so the
    activation needs no lane padding.  Output lane index = wo*Cout + co."""
    KH, KW, Cin, Cout = w_hwio.shape
    wi = jnp.arange(W)                                   # input column
    wo = jnp.arange(W)                                   # output column
    dx = jnp.arange(KW)
    sel = (wi[None, :, None] == (wo[None, None, :] + dx[:, None, None] - 1))
    sel = sel.astype(w_hwio.dtype)                       # (KW, W, W)
    # mat[dy, wi, ci, wo, co] = sum_dx sel[dx, wi, wo] * w[dy, dx, ci, co]
    mat = jnp.einsum('xiw,yxcf->yicwf', sel, w_hwio)
    return mat.reshape(KH, W * Cin, W * Cout).astype(dtype)


def fold_bn_from_stats(sums, sumsqs, count, gamma, beta, W, Cout):
    """Training-mode BatchNorm (batch mean, biased variance) folded to scale/shift.
    `sums`/`sumsqs` are lane-dense (G, 1, W*Cout) partials from the conv kernel."""
    s = jnp.sum(sums.reshape(-1, W, Cout), axis=(0, 1))
    q = jnp.sum(sumsqs.reshape(-1, W, Cout), axis=(0, 1))
    mean = s / count
    # NOTE: one-pass E[x^2]-E[x]^2 in f32; fine for unit-scale activations.
    var = jnp.maximum(q / count - mean * mean, 0.0)
    scale = gamma * jax.lax.rsqrt(var + BN_EPS)
    shift = beta - mean * scale
    return scale, shift


def tile_lanes(v, W):
    """Per-channel vector (C,) -> (1, W*C), matching lane index w*C + c."""
    return jnp.tile(v, W)[None, :]


@jax.jit
def double_conv_forward(x_nchw, params):
    """DoubleConv forward (use_bn=True). NCHW in / NCHW out (PyTorch convention)."""
    N, Cin, H, W = x_nchw.shape
    Cout = params["w1"].shape[-1]
    x = jnp.transpose(x_nchw, (0, 2, 3, 1)).reshape(N, H, W * Cin)   # lane-dense NHWC

    w1_band = conv_weight_to_banded(params["w1"], W)
    w2_band = conv_weight_to_banded(params["w2"], W)
    Nb = _pick_batch_block(N, H)
    count = N * H * W

    # Stage 1: conv + in-kernel lane-dense partial stats.  Conv bias omitted:
    # it is exactly cancelled by train-mode BatchNorm's mean subtraction.
    ones = jnp.ones((1, W * Cin), jnp.float32)
    zeros = jnp.zeros((1, W * Cin), jnp.float32)
    y1, s1, q1 = conv_stage(x, ones, zeros, w1_band,
                            Nb=Nb, H=H, W=W, Cin=Cin, Cout=Cout, fuse_act=False)
    scale1, shift1 = fold_bn_from_stats(s1, q1, count, params["g1"], params["beta1"],
                                        W, Cout)

    # Stage 2: BN1 + LeakyReLU fused into the conv prologue (a1 never hits HBM).
    y2, s2, q2 = conv_stage(y1, tile_lanes(scale1, W), tile_lanes(shift1, W), w2_band,
                            Nb=Nb, H=H, W=W, Cin=Cout, Cout=Cout, fuse_act=True)
    scale2, shift2 = fold_bn_from_stats(s2, q2, count, params["g2"], params["beta2"],
                                        W, Cout)

    # Final BN + LeakyReLU (needs the full-batch stats of y2 -> separate pass).
    a2 = bn_lrelu(y2, tile_lanes(scale2, W), tile_lanes(shift2, W), Nb=Nb)

    # TODO(synk): fuse this NHWC->NCHW relayout into bn_lrelu to save one HBM pass.
    return jnp.transpose(a2.reshape(N, H, W, Cout), (0, 3, 1, 2))


def init_params(key, in_channels, out_channels):
    k = jax.random.split(key, 8)
    # Conv weights in OIHW (PyTorch) -> HWIO.
    w1 = 0.1 * jax.random.normal(k[0], (out_channels, in_channels, 3, 3), jnp.float32)
    w2 = 0.1 * jax.random.normal(k[1], (out_channels, out_channels, 3, 3), jnp.float32)
    return {
        "w1": jnp.transpose(w1, (2, 3, 1, 0)),
        "w2": jnp.transpose(w2, (2, 3, 1, 0)),
        # Conv biases: kept as parameters (nn.Conv2d default) but not applied in the
        # kernels — train-mode BN cancels them exactly (the reference applies them).
        "b1": 0.1 * jax.random.normal(k[2], (out_channels,), jnp.float32),
        "b2": 0.1 * jax.random.normal(k[3], (out_channels,), jnp.float32),
        "g1": 1.0 + 0.1 * jax.random.normal(k[4], (out_channels,), jnp.float32),
        "g2": 1.0 + 0.1 * jax.random.normal(k[5], (out_channels,), jnp.float32),
        "beta1": 0.05 * jax.random.normal(k[6], (out_channels,), jnp.float32),
        "beta2": 0.05 * jax.random.normal(k[7], (out_channels,), jnp.float32),
    }


def reference_double_conv(x_nchw, params):
    """Pure-XLA f32 reference: Conv2d(3x3, pad=1, +bias) -> BN(train) -> LeakyReLU, x2."""
    x = jnp.transpose(x_nchw, (0, 2, 3, 1))

    def stage(inp, w, b, g, beta):
        dn = jax.lax.conv_dimension_numbers(inp.shape, w.shape, ('NHWC', 'HWIO', 'NHWC'))
        y = jax.lax.conv_general_dilated(inp, w, (1, 1), ((1, 1), (1, 1)),
                                         dimension_numbers=dn) + b
        mean = jnp.mean(y, axis=(0, 1, 2))
        var = jnp.mean((y - mean) ** 2, axis=(0, 1, 2))   # biased, as in BN training
        z = (y - mean) * jax.lax.rsqrt(var + BN_EPS) * g + beta
        return jnp.where(z >= 0, z, NEG_SLOPE * z)

    a1 = stage(x, params["w1"], params["b1"], params["g1"], params["beta1"])
    a2 = stage(a1, params["w2"], params["b2"], params["g2"], params["beta2"])
    return jnp.transpose(a2, (0, 3, 1, 2))


if __name__ == "__main__":
    key = jax.random.PRNGKey(0)
    kx, kp = jax.random.split(key)

    in_channels, out_channels = 4, 8
    N, H, W = 2, 16, 16                       # W * out_channels = 128 -> lane-dense
    x = jax.random.normal(kx, (N, in_channels, H, W), jnp.float32)   # NCHW

    params = init_params(kp, in_channels, out_channels)

    out = double_conv_forward(x, params)
    jax.block_until_ready(out)
    assert out.shape == (N, out_channels, H, W), out.shape

    ref = reference_double_conv(x, params)
    err = float(jnp.max(jnp.abs(out - ref)))
    # bf16 MXU operands (f32 accumulation, f32 BN/LeakyReLU math) vs a pure-f32
    # reference: expect ~1e-2 max abs error on unit-scale activations.
    assert err < 5e-2, f"max abs error vs reference: {err}"

    print("KERNEL_OK")
</pallas_src>

<mosaic_0001>
module attributes {stable_mosaic.version = 11 : i64} {
  func.func @_conv_stage_kernel(%arg0: i32, %arg1: memref<2x16x64xf32, #tpu.memory_space<vmem>>, %arg2: memref<1x64xf32, #tpu.memory_space<vmem>>, %arg3: memref<1x64xf32, #tpu.memory_space<vmem>>, %arg4: memref<3x64x128xbf16, #tpu.memory_space<vmem>>, %arg5: memref<2x16x128xf32, #tpu.memory_space<vmem>>, %arg6: memref<1x1x128xf32, #tpu.memory_space<vmem>>, %arg7: memref<1x1x128xf32, #tpu.memory_space<vmem>>, %arg8: memref<2x18x64xf32, #tpu.memory_space<vmem>>) attributes {dimension_semantics = [#tpu.dimension_semantics<parallel>], iteration_bounds = array<i64: 1>, scalar_prefetch = 0 : i64, scratch_operands = 1 : i64, tpu.core_type = #tpu.core_type<tc>, window_params = [{transform_indices = @transform_0, window_bounds = array<i64: 2, 16, 64>}, {pipeline_mode = #tpu.pipeline_mode<synchronous>, transform_indices = @transform_1, window_bounds = array<i64: 1, 64>}, {pipeline_mode = #tpu.pipeline_mode<synchronous>, transform_indices = @transform_2, window_bounds = array<i64: 1, 64>}, {pipeline_mode = #tpu.pipeline_mode<synchronous>, transform_indices = @transform_3, window_bounds = array<i64: 3, 64, 128>}, {transform_indices = @transform_4, window_bounds = array<i64: 2, 16, 128>}, {transform_indices = @transform_5, window_bounds = array<i64: 1, 1, 128>}, {transform_indices = @transform_6, window_bounds = array<i64: 1, 1, 128>}]} {
    %c0 = arith.constant 0 : index
    %c0_0 = arith.constant 0 : index
    %c0_1 = arith.constant 0 : index
    %0 = vector.load %arg1[%c0, %c0_0, %c0_1] : memref<2x16x64xf32, #tpu.memory_space<vmem>>, vector<2x16x64xf32>
    %cst = arith.constant 0.000000e+00 : f32
    %1 = vector.broadcast %cst : f32 to vector<2x1x64xf32>
    %c0_2 = arith.constant 0 : index
    %c0_3 = arith.constant 0 : index
    %c0_4 = arith.constant 0 : index
    %2 = vector.load %arg8[%c0_2, %c0_3, %c0_4] : memref<2x18x64xf32, #tpu.memory_space<vmem>>, vector<2x1x64xf32>
    tpu.vector_store %arg8[%c0_2, %c0_3, %c0_4], %1 {strides = array<i32>} : memref<2x18x64xf32, #tpu.memory_space<vmem>>, vector<2x1x64xf32>,
    %cst_5 = arith.constant 0.000000e+00 : f32
    %3 = vector.broadcast %cst_5 : f32 to vector<2x1x64xf32>
    %c0_6 = arith.constant 0 : index
    %c17 = arith.constant 17 : index
    %c0_7 = arith.constant 0 : index
    %4 = vector.load %arg8[%c0_6, %c17, %c0_7] : memref<2x18x64xf32, #tpu.memory_space<vmem>>, vector<2x1x64xf32>
    tpu.vector_store %arg8[%c0_6, %c17, %c0_7], %3 {strides = array<i32>} : memref<2x18x64xf32, #tpu.memory_space<vmem>>, vector<2x1x64xf32>,
    %c0_8 = arith.constant 0 : index
    %c1 = arith.constant 1 : index
    %c0_9 = arith.constant 0 : index
    %5 = vector.load %arg8[%c0_8, %c1, %c0_9] : memref<2x18x64xf32, #tpu.memory_space<vmem>>, vector<2x16x64xf32>
    tpu.vector_store %arg8[%c0_8, %c1, %c0_9], %0 {strides = array<i32>} : memref<2x18x64xf32, #tpu.memory_space<vmem>>, vector<2x16x64xf32>,
    %c0_10 = arith.constant 0 : index
    %c0_11 = arith.constant 0 : index
    %c0_12 = arith.constant 0 : index
    %6 = vector.load %arg8[%c0_10, %c0_11, %c0_12] : memref<2x18x64xf32, #tpu.memory_space<vmem>>, vector<2x16x64xf32>
    %7 = vector.shape_cast %6 : vector<2x16x64xf32> to vector<32x64xf32>
    %8 = arith.truncf %7 : vector<32x64xf32> to vector<32x64xbf16>
    %c0_13 = arith.constant 0 : index
    %c0_14 = arith.constant 0 : index
    %c0_15 = arith.constant 0 : index
    %9 = vector.load %arg4[%c0_13, %c0_14, %c0_15] : memref<3x64x128xbf16, #tpu.memory_space<vmem>>, vector<1x64x128xbf16>
    %10 = vector.shape_cast %9 : vector<1x64x128xbf16> to vector<64x128xbf16>
    %cst_16 = arith.constant dense<0.000000e+00> : vector<32x128xf32>
    %11 = tpu.matmul %8, %10, %cst_16 {dimension_numbers = #tpu.dot_dimension_numbers<[1], [0], [0], [1], [0, 0, 1, 1], [], []>} : vector<32x64xbf16>, vector<64x128xbf16>, vector<32x128xf32> -> vector<32x128xf32>
    %c0_17 = arith.constant 0 : index
    %c1_18 = arith.constant 1 : index
    %c0_19 = arith.constant 0 : index
    %12 = vector.load %arg8[%c0_17, %c1_18, %c0_19] : memref<2x18x64xf32, #tpu.memory_space<vmem>>, vector<2x16x64xf32>
    %13 = vector.shape_cast %12 : vector<2x16x64xf32> to vector<32x64xf32>
    %14 = arith.truncf %13 : vector<32x64xf32> to vector<32x64xbf16>
    %c1_20 = arith.constant 1 : index
    %c0_21 = arith.constant 0 : index
    %c0_22 = arith.constant 0 : index
    %15 = vector.load %arg4[%c1_20, %c0_21, %c0_22] : memref<3x64x128xbf16, #tpu.memory_space<vmem>>, vector<1x64x128xbf16>
    %16 = vector.shape_cast %15 : vector<1x64x128xbf16> to vector<64x128xbf16>
    %cst_23 = arith.constant dense<0.000000e+00> : vector<32x128xf32>
    %17 = tpu.matmul %14, %16, %cst_23 {dimension_numbers = #tpu.dot_dimension_numbers<[1], [0], [0], [1], [0, 0, 1, 1], [], []>} : vector<32x64xbf16>, vector<64x128xbf16>, vector<32x128xf32> -> vector<32x128xf32>
    %18 = arith.addf %11, %17 : vector<32x128xf32>
    %c0_24 = arith.constant 0 : index
    %c2 = arith.constant 2 : index
    %c0_25 = arith.constant 0 : index
    %19 = vector.load %arg8[%c0_24, %c2, %c0_25] : memref<2x18x64xf32, #tpu.memory_space<vmem>>, vector<2x16x64xf32>
    %20 = vector.shape_cast %19 : vector<2x16x64xf32> to vector<32x64xf32>
    %21 = arith.truncf %20 : vector<32x64xf32> to vector<32x64xbf16>
    %c2_26 = arith.constant 2 : index
    %c0_27 = arith.constant 0 : index
    %c0_28 = arith.constant 0 : index
    %22 = vector.load %arg4[%c2_26, %c0_27, %c0_28] : memref<3x64x128xbf16, #tpu.memory_space<vmem>>, vector<1x64x128xbf16>
    %23 = vector.shape_cast %22 : vector<1x64x128xbf16> to vector<64x128xbf16>
    %cst_29 = arith.constant dense<0.000000e+00> : vector<32x128xf32>
    %24 = tpu.matmul %21, %23, %cst_29 {dimension_numbers = #tpu.dot_dimension_numbers<[1], [0], [0], [1], [0, 0, 1, 1], [], []>} : vector<32x64xbf16>, vector<64x128xbf16>, vector<32x128xf32> -> vector<32x128xf32>
    %25 = arith.addf %18, %24 : vector<32x128xf32>
    %26 = vector.shape_cast %25 : vector<32x128xf32> to vector<2x16x128xf32>
    %c0_30 = arith.constant 0 : index
    %c0_31 = arith.constant 0 : index
    %c0_32 = arith.constant 0 : index
    %27 = vector.load %arg5[%c0_30, %c0_31, %c0_32] : memref<2x16x128xf32, #tpu.memory_space<vmem>>, vector<2x16x128xf32>
    tpu.vector_store %arg5[%c0_30, %c0_31, %c0_32], %26 {strides = array<i32>} : memref<2x16x128xf32, #tpu.memory_space<vmem>>, vector<2x16x128xf32>,
    %cst_33 = arith.constant dense<0.000000e+00> : vector<128xf32>
    %28 = vector.multi_reduction <add>, %25, %cst_33 [0] : vector<32x128xf32> to vector<128xf32>
    %29 = vector.shape_cast %28 : vector<128xf32> to vector<1x128xf32>
    %c0_34 = arith.constant 0 : index
    %c0_35 = arith.constant 0 : index
    %c0_36 = arith.constant 0 : index
    %30 = vector.load %arg6[%c0_34, %c0_35, %c0_36] : memref<1x1x128xf32, #tpu.memory_space<vmem>>, vector<1x1x128xf32>
    %31 = vector.shape_cast %30 : vector<1x1x128xf32> to vector<1x128xf32>
    %32 = vector.shape_cast %29 : vector<1x128xf32> to vector<1x1x128xf32>
    tpu.vector_store %arg6[%c0_34, %c0_35, %c0_36], %32 {strides = array<i32>} : memref<1x1x128xf32, #tpu.memory_space<vmem>>, vector<1x1x128xf32>,
    %33 = arith.mulf %25, %25 : vector<32x128xf32>
    %cst_37 = arith.constant dense<0.000000e+00> : vector<128xf32>
    %34 = vector.multi_reduction <add>, %33, %cst_37 [0] : vector<32x128xf32> to vector<128xf32>
    %35 = vector.shape_cast %34 : vector<128xf32> to vector<1x128xf32>
    %c0_38 = arith.constant 0 : index
    %c0_39 = arith.constant 0 : index
    %c0_40 = arith.constant 0 : index
    %36 = vector.load %arg7[%c0_38, %c0_39, %c0_40] : memref<1x1x128xf32, #tpu.memory_space<vmem>>, vector<1x1x128xf32>
    %37 = vector.shape_cast %36 : vector<1x1x128xf32> to vector<1x128xf32>
    %38 = vector.shape_cast %35 : vector<1x128xf32> to vector<1x1x128xf32>
    tpu.vector_store %arg7[%c0_38, %c0_39, %c0_40], %38 {strides = array<i32>} : memref<1x1x128xf32, #tpu.memory_space<vmem>>, vector<1x1x128xf32>,
    return
  }
  func.func @transform_0(%arg0: i32) -> (i32, i32, i32) {
    %c0_i32 = arith.constant 0 : i32
    %c0_i32_0 = arith.constant 0 : i32
    %c0_i32_1 = arith.constant 0 : i32
    return %arg0, %c0_i32, %c0_i32_0 : i32, i32, i32
  }
  func.func @transform_1(%arg0: i32) -> (i32, i32) {
    %c0_i32 = arith.constant 0 : i32
    %c0_i32_0 = arith.constant 0 : i32
    %c0_i32_1 = arith.constant 0 : i32
    return %c0_i32, %c0_i32_0 : i32, i32
  }
  func.func @transform_2(%arg0: i32) -> (i32, i32) {
    %c0_i32 = arith.constant 0 : i32
    %c0_i32_0 = arith.constant 0 : i32
    %c0_i32_1 = arith.constant 0 : i32
    return %c0_i32, %c0_i32_0 : i32, i32
  }
  func.func @transform_3(%arg0: i32) -> (i32, i32, i32) {
    %c0_i32 = arith.constant 0 : i32
    %c0_i32_0 = arith.constant 0 : i32
    %c0_i32_1 = arith.constant 0 : i32
    %c0_i32_2 = arith.constant 0 : i32
    return %c0_i32, %c0_i32_0, %c0_i32_1 : i32, i32, i32
  }
  func.func @transform_4(%arg0: i32) -> (i32, i32, i32) {
    %c0_i32 = arith.constant 0 : i32
    %c0_i32_0 = arith.constant 0 : i32
    %c0_i32_1 = arith.constant 0 : i32
    return %arg0, %c0_i32, %c0_i32_0 : i32, i32, i32
  }
  func.func @transform_5(%arg0: i32) -> (i32, i32, i32) {
    %c0_i32 = arith.constant 0 : i32
    %c0_i32_0 = arith.constant 0 : i32
    %c0_i32_1 = arith.constant 0 : i32
    return %arg0, %c0_i32, %c0_i32_0 : i32, i32, i32
  }
  func.func @transform_6(%arg0: i32) -> (i32, i32, i32) {
    %c0_i32 = arith.constant 0 : i32
    %c0_i32_0 = arith.constant 0 : i32
    %c0_i32_1 = arith.constant 0 : i32
    return %arg0, %c0_i32, %c0_i32_0 : i32, i32, i32
  }
}

module attributes {stable_mosaic.version = 11 : i64} {
  func.func @_conv_stage_kernel(%arg0: i32, %arg1: memref<2x16x128xf32, #tpu.memory_space<vmem>>, %arg2: memref<1x128xf32, #tpu.memory_space<vmem>>, %arg3: memref<1x128xf32, #tpu.memory_space<vmem>>, %arg4: memref<3x128x128xbf16, #tpu.memory_space<vmem>>, %arg5: memref<2x16x128xf32, #tpu.memory_space<vmem>>, %arg6: memref<1x1x128xf32, #tpu.memory_space<vmem>>, %arg7: memref<1x1x128xf32, #tpu.memory_space<vmem>>, %arg8: memref<2x18x128xf32, #tpu.memory_space<vmem>>) attributes {dimension_semantics = [#tpu.dimension_semantics<parallel>], iteration_bounds = array<i64: 1>, scalar_prefetch = 0 : i64, scratch_operands = 1 : i64, tpu.core_type = #tpu.core_type<tc>, window_params = [{transform_indices = @transform_0, window_bounds = array<i64: 2, 16, 128>}, {pipeline_mode = #tpu.pipeline_mode<synchronous>, transform_indices = @transform_1, window_bounds = array<i64: 1, 128>}, {pipeline_mode = #tpu.pipeline_mode<synchronous>, transform_indices = @transform_2, window_bounds = array<i64: 1, 128>}, {pipeline_mode = #tpu.pipeline_mode<synchronous>, transform_indices = @transform_3, window_bounds = array<i64: 3, 128, 128>}, {transform_indices = @transform_4, window_bounds = array<i64: 2, 16, 128>}, {transform_indices = @transform_5, window_bounds = array<i64: 1, 1, 128>}, {transform_indices = @transform_6, window_bounds = array<i64: 1, 1, 128>}]} {
    %c0 = arith.constant 0 : index
    %c0_0 = arith.constant 0 : index
    %c0_1 = arith.constant 0 : index
    %0 = vector.load %arg1[%c0, %c0_0, %c0_1] : memref<2x16x128xf32, #tpu.memory_space<vmem>>, vector<2x16x128xf32>
    %c0_2 = arith.constant 0 : index
    %c0_3 = arith.constant 0 : index
    %1 = vector.load %arg2[%c0_2, %c0_3] : memref<1x128xf32, #tpu.memory_space<vmem>>, vector<1x128xf32>
    %2 = vector.shape_cast %1 : vector<1x128xf32> to vector<1x1x128xf32>
    %3 = vector.broadcast %2 : vector<1x1x128xf32> to vector<2x16x128xf32>
    %4 = arith.mulf %0, %3 : vector<2x16x128xf32>
    %c0_4 = arith.constant 0 : index
    %c0_5 = arith.constant 0 : index
    %5 = vector.load %arg3[%c0_4, %c0_5] : memref<1x128xf32, #tpu.memory_space<vmem>>, vector<1x128xf32>
    %6 = vector.shape_cast %5 : vector<1x128xf32> to vector<1x1x128xf32>
    %7 = vector.broadcast %6 : vector<1x1x128xf32> to vector<2x16x128xf32>
    %8 = arith.addf %4, %7 : vector<2x16x128xf32>
    %cst = arith.constant 0.00999999977 : f32
    %9 = vector.broadcast %cst : f32 to vector<2x16x128xf32>
    %10 = arith.mulf %9, %8 : vector<2x16x128xf32>
    %11 = arith.maximumf %8, %10 : vector<2x16x128xf32>
    %cst_6 = arith.constant 0.000000e+00 : f32
    %12 = vector.broadcast %cst_6 : f32 to vector<2x1x128xf32>
    %c0_7 = arith.constant 0 : index
    %c0_8 = arith.constant 0 : index
    %c0_9 = arith.constant 0 : index
    %13 = vector.load %arg8[%c0_7, %c0_8, %c0_9] : memref<2x18x128xf32, #tpu.memory_space<vmem>>, vector<2x1x128xf32>
    tpu.vector_store %arg8[%c0_7, %c0_8, %c0_9], %12 {strides = array<i32>} : memref<2x18x128xf32, #tpu.memory_space<vmem>>, vector<2x1x128xf32>,
    %cst_10 = arith.constant 0.000000e+00 : f32
    %14 = vector.broadcast %cst_10 : f32 to vector<2x1x128xf32>
    %c0_11 = arith.constant 0 : index
    %c17 = arith.constant 17 : index
    %c0_12 = arith.constant 0 : index
    %15 = vector.load %arg8[%c0_11, %c17, %c0_12] : memref<2x18x128xf32, #tpu.memory_space<vmem>>, vector<2x1x128xf32>
    tpu.vector_store %arg8[%c0_11, %c17, %c0_12], %14 {strides = array<i32>} : memref<2x18x128xf32, #tpu.memory_space<vmem>>, vector<2x1x128xf32>,
    %c0_13 = arith.constant 0 : index
    %c1 = arith.constant 1 : index
    %c0_14 = arith.constant 0 : index
    %16 = vector.load %arg8[%c0_13, %c1, %c0_14] : memref<2x18x128xf32, #tpu.memory_space<vmem>>, vector<2x16x128xf32>
    tpu.vector_store %arg8[%c0_13, %c1, %c0_14], %11 {strides = array<i32>} : memref<2x18x128xf32, #tpu.memory_space<vmem>>, vector<2x16x128xf32>,
    %c0_15 = arith.constant 0 : index
    %c0_16 = arith.constant 0 : index
    %c0_17 = arith.constant 0 : index
    %17 = vector.load %arg8[%c0_15, %c0_16, %c0_17] : memref<2x18x128xf32, #tpu.memory_space<vmem>>, vector<2x16x128xf32>
    %18 = vector.shape_cast %17 : vector<2x16x128xf32> to vector<32x128xf32>
    %19 = arith.truncf %18 : vector<32x128xf32> to vector<32x128xbf16>
    %c0_18 = arith.constant 0 : index
    %c0_19 = arith.constant 0 : index
    %c0_20 = arith.constant 0 : index
    %20 = vector.load %arg4[%c0_18, %c0_19, %c0_20] : memref<3x128x128xbf16, #tpu.memory_space<vmem>>, vector<1x128x128xbf16>
    %21 = vector.shape_cast %20 : vector<1x128x128xbf16> to vector<128x128xbf16>
    %cst_21 = arith.constant dense<0.000000e+00> : vector<32x128xf32>
    %22 = tpu.matmul %19, %21, %cst_21 {dimension_numbers = #tpu.dot_dimension_numbers<[1], [0], [0], [1], [0, 0, 1, 1], [], []>} : vector<32x128xbf16>, vector<128x128xbf16>, vector<32x128xf32> -> vector<32x128xf32>
    %c0_22 = arith.constant 0 : index
    %c1_23 = arith.constant 1 : index
    %c0_24 = arith.constant 0 : index
    %23 = vector.load %arg8[%c0_22, %c1_23, %c0_24] : memref<2x18x128xf32, #tpu.memory_space<vmem>>, vector<2x16x128xf32>
    %24 = vector.shape_cast %23 : vector<2x16x128xf32> to vector<32x128xf32>
    %25 = arith.truncf %24 : vector<32x128xf32> to vector<32x128xbf16>
    %c1_25 = arith.constant 1 : index
    %c0_26 = arith.constant 0 : index
    %c0_27 = arith.constant 0 : index
    %26 = vector.load %arg4[%c1_25, %c0_26, %c0_27] : memref<3x128x128xbf16, #tpu.memory_space<vmem>>, vector<1x128x128xbf16>
    %27 = vector.shape_cast %26 : vector<1x128x128xbf16> to vector<128x128xbf16>
    %cst_28 = arith.constant dense<0.000000e+00> : vector<32x128xf32>
    %28 = tpu.matmul %25, %27, %cst_28 {dimension_numbers = #tpu.dot_dimension_numbers<[1], [0], [0], [1], [0, 0, 1, 1], [], []>} : vector<32x128xbf16>, vector<128x128xbf16>, vector<32x128xf32> -> vector<32x128xf32>
    %29 = arith.addf %22, %28 : vector<32x128xf32>
    %c0_29 = arith.constant 0 : index
    %c2 = arith.constant 2 : index
    %c0_30 = arith.constant 0 : index
    %30 = vector.load %arg8[%c0_29, %c2, %c0_30] : memref<2x18x128xf32, #tpu.memory_space<vmem>>, vector<2x16x128xf32>
    %31 = vector.shape_cast %30 : vector<2x16x128xf32> to vector<32x128xf32>
    %32 = arith.truncf %31 : vector<32x128xf32> to vector<32x128xbf16>
    %c2_31 = arith.constant 2 : index
    %c0_32 = arith.constant 0 : index
    %c0_33 = arith.constant 0 : index
    %33 = vector.load %arg4[%c2_31, %c0_32, %c0_33] : memref<3x128x128xbf16, #tpu.memory_space<vmem>>, vector<1x128x128xbf16>
    %34 = vector.shape_cast %33 : vector<1x128x128xbf16> to vector<128x128xbf16>
    %cst_34 = arith.constant dense<0.000000e+00> : vector<32x128xf32>
    %35 = tpu.matmul %32, %34, %cst_34 {dimension_numbers = #tpu.dot_dimension_numbers<[1], [0], [0], [1], [0, 0, 1, 1], [], []>} : vector<32x128xbf16>, vector<128x128xbf16>, vector<32x128xf32> -> vector<32x128xf32>
    %36 = arith.addf %29, %35 : vector<32x128xf32>
    %37 = vector.shape_cast %36 : vector<32x128xf32> to vector<2x16x128xf32>
    %c0_35 = arith.constant 0 : index
    %c0_36 = arith.constant 0 : index
    %c0_37 = arith.constant 0 : index
    %38 = vector.load %arg5[%c0_35, %c0_36, %c0_37] : memref<2x16x128xf32, #tpu.memory_space<vmem>>, vector<2x16x128xf32>
    tpu.vector_store %arg5[%c0_35, %c0_36, %c0_37], %37 {strides = array<i32>} : memref<2x16x128xf32, #tpu.memory_space<vmem>>, vector<2x16x128xf32>,
    %cst_38 = arith.constant dense<0.000000e+00> : vector<128xf32>
    %39 = vector.multi_reduction <add>, %36, %cst_38 [0] : vector<32x128xf32> to vector<128xf32>
    %40 = vector.shape_cast %39 : vector<128xf32> to vector<1x128xf32>
    %c0_39 = arith.constant 0 : index
    %c0_40 = arith.constant 0 : index
    %c0_41 = arith.constant 0 : index
    %41 = vector.load %arg6[%c0_39, %c0_40, %c0_41] : memref<1x1x128xf32, #tpu.memory_space<vmem>>, vector<1x1x128xf32>
    %42 = vector.shape_cast %41 : vector<1x1x128xf32> to vector<1x128xf32>
    %43 = vector.shape_cast %40 : vector<1x128xf32> to vector<1x1x128xf32>
    tpu.vector_store %arg6[%c0_39, %c0_40, %c0_41], %43 {strides = array<i32>} : memref<1x1x128xf32, #tpu.memory_space<vmem>>, vector<1x1x128xf32>,
    %44 = arith.mulf %36, %36 : vector<32x128xf32>
    %cst_42 = arith.constant dense<0.000000e+00> : vector<128xf32>
    %45 = vector.multi_reduction <add>, %44, %cst_42 [0] : vector<32x128xf32> to vector<128xf32>
    %46 = vector.shape_cast %45 : vector<128xf32> to vector<1x128xf32>
    %c0_43 = arith.constant 0 : index
    %c0_44 = arith.constant 0 : index
    %c0_45 = arith.constant 0 : index
    %47 = vector.load %arg7[%c0_43, %c0_44, %c0_45] : memref<1x1x128xf32, #tpu.memory_space<vmem>>, vector<1x1x128xf32>
    %48 = vector.shape_cast %47 : vector<1x1x128xf32> to vector<1x128xf32>
    %49 = vector.shape_cast %46 : vector<1x128xf32> to vector<1x1x128xf32>
    tpu.vector_store %arg7[%c0_43, %c0_44, %c0_45], %49 {strides = array<i32>} : memref<1x1x128xf32, #tpu.memory_space<vmem>>, vector<1x1x128xf32>,
    return
  }
  func.func @transform_0(%arg0: i32) -> (i32, i32, i32) {
    %c0_i32 = arith.constant 0 : i32
    %c0_i32_0 = arith.constant 0 : i32
    %c0_i32_1 = arith.constant 0 : i32
    return %arg0, %c0_i32, %c0_i32_0 : i32, i32, i32
  }
  func.func @transform_1(%arg0: i32) -> (i32, i32) {
    %c0_i32 = arith.constant 0 : i32
    %c0_i32_0 = arith.constant 0 : i32
    %c0_i32_1 = arith.constant 0 : i32
    return %c0_i32, %c0_i32_0 : i32, i32
  }
  func.func @transform_2(%arg0: i32) -> (i32, i32) {
    %c0_i32 = arith.constant 0 : i32
    %c0_i32_0 = arith.constant 0 : i32
    %c0_i32_1 = arith.constant 0 : i32
    return %c0_i32, %c0_i32_0 : i32, i32
  }
  func.func @transform_3(%arg0: i32) -> (i32, i32, i32) {
    %c0_i32 = arith.constant 0 : i32
    %c0_i32_0 = arith.constant 0 : i32
    %c0_i32_1 = arith.constant 0 : i32
    %c0_i32_2 = arith.constant 0 : i32
    return %c0_i32, %c0_i32_0, %c0_i32_1 : i32, i32, i32
  }
  func.func @transform_4(%arg0: i32) -> (i32, i32, i32) {
    %c0_i32 = arith.constant 0 : i32
    %c0_i32_0 = arith.constant 0 : i32
    %c0_i32_1 = arith.constant 0 : i32
    return %arg0, %c0_i32, %c0_i32_0 : i32, i32, i32
  }
  func.func @transform_5(%arg0: i32) -> (i32, i32, i32) {
    %c0_i32 = arith.constant 0 : i32
    %c0_i32_0 = arith.constant 0 : i32
    %c0_i32_1 = arith.constant 0 : i32
    return %arg0, %c0_i32, %c0_i32_0 : i32, i32, i32
  }
  func.func @transform_6(%arg0: i32) -> (i32, i32, i32) {
    %c0_i32 = arith.constant 0 : i32
    %c0_i32_0 = arith.constant 0 : i32
    %c0_i32_1 = arith.constant 0 : i32
    return %arg0, %c0_i32, %c0_i32_0 : i32, i32, i32
  }
}

module attributes {stable_mosaic.version = 11 : i64} {
  func.func @_bn_lrelu_kernel(%arg0: i32, %arg1: memref<2x16x128xf32, #tpu.memory_space<vmem>>, %arg2: memref<1x128xf32, #tpu.memory_space<vmem>>, %arg3: memref<1x128xf32, #tpu.memory_space<vmem>>, %arg4: memref<2x16x128xf32, #tpu.memory_space<vmem>>) attributes {dimension_semantics = [#tpu.dimension_semantics<parallel>], iteration_bounds = array<i64: 1>, scalar_prefetch = 0 : i64, scratch_operands = 0 : i64, tpu.core_type = #tpu.core_type<tc>, window_params = [{transform_indices = @transform_0, window_bounds = array<i64: 2, 16, 128>}, {pipeline_mode = #tpu.pipeline_mode<synchronous>, transform_indices = @transform_1, window_bounds = array<i64: 1, 128>}, {pipeline_mode = #tpu.pipeline_mode<synchronous>, transform_indices = @transform_2, window_bounds = array<i64: 1, 128>}, {transform_indices = @transform_3, window_bounds = array<i64: 2, 16, 128>}]} {
    %c0 = arith.constant 0 : index
    %c0_0 = arith.constant 0 : index
    %c0_1 = arith.constant 0 : index
    %0 = vector.load %arg1[%c0, %c0_0, %c0_1] : memref<2x16x128xf32, #tpu.memory_space<vmem>>, vector<2x16x128xf32>
    %c0_2 = arith.constant 0 : index
    %c0_3 = arith.constant 0 : index
    %1 = vector.load %arg2[%c0_2, %c0_3] : memref<1x128xf32, #tpu.memory_space<vmem>>, vector<1x128xf32>
    %2 = vector.shape_cast %1 : vector<1x128xf32> to vector<1x1x128xf32>
    %3 = vector.broadcast %2 : vector<1x1x128xf32> to vector<2x16x128xf32>
    %4 = arith.mulf %0, %3 : vector<2x16x128xf32>
    %c0_4 = arith.constant 0 : index
    %c0_5 = arith.constant 0 : index
    %5 = vector.load %arg3[%c0_4, %c0_5] : memref<1x128xf32, #tpu.memory_space<vmem>>, vector<1x128xf32>
    %6 = vector.shape_cast %5 : vector<1x128xf32> to vector<1x1x128xf32>
    %7 = vector.broadcast %6 : vector<1x1x128xf32> to vector<2x16x128xf32>
    %8 = arith.addf %4, %7 : vector<2x16x128xf32>
    %cst = arith.constant 0.00999999977 : f32
    %9 = vector.broadcast %cst : f32 to vector<2x16x128xf32>
    %10 = arith.mulf %9, %8 : vector<2x16x128xf32>
    %11 = arith.maximumf %8, %10 : vector<2x16x128xf32>
    %c0_6 = arith.constant 0 : index
    %c0_7 = arith.constant 0 : index
    %c0_8 = arith.constant 0 : index
    %12 = vector.load %arg4[%c0_6, %c0_7, %c0_8] : memref<2x16x128xf32, #tpu.memory_space<vmem>>, vector<2x16x128xf32>
    tpu.vector_store %arg4[%c0_6, %c0_7, %c0_8], %11 {strides = array<i32>} : memref<2x16x128xf32, #tpu.memory_space<vmem>>, vector<2x16x128xf32>,
    return
  }
  func.func @transform_0(%arg0: i32) -> (i32, i32, i32) {
    %c0_i32 = arith.constant 0 : i32
    %c0_i32_0 = arith.constant 0 : i32
    %c0_i32_1 = arith.constant 0 : i32
    return %arg0, %c0_i32, %c0_i32_0 : i32, i32, i32
  }
  func.func @transform_1(%arg0: i32) -> (i32, i32) {
    %c0_i32 = arith.constant 0 : i32
    %c0_i32_0 = arith.constant 0 : i32
    %c0_i32_1 = arith.constant 0 : i32
    return %c0_i32, %c0_i32_0 : i32, i32
  }
  func.func @transform_2(%arg0: i32) -> (i32, i32) {
    %c0_i32 = arith.constant 0 : i32
    %c0_i32_0 = arith.constant 0 : i32
    %c0_i32_1 = arith.constant 0 : i32
    return %c0_i32, %c0_i32_0 : i32, i32
  }
  func.func @transform_3(%arg0: i32) -> (i32, i32, i32) {
    %c0_i32 = arith.constant 0 : i32
    %c0_i32_0 = arith.constant 0 : i32
    %c0_i32_1 = arith.constant 0 : i32
    return %arg0, %c0_i32, %c0_i32_0 : i32, i32, i32
  }
}

</mosaic_0001>

<bundles_post_ra>
// kernel: tile.28
= control target key start
LH: loop header
LB: loop body
LE: loop exit
PB: predicated region body
PF: predicated region fallthrough
CT: control target
= control target key end

     0   :  { %s28_s0 = inlined_call_operand.vmem [shape: f32[8], index: 0, kind: input, shape index: {}]   ;;  %s29_s1 = inlined_call_operand.vmem [shape: f32[16,8], index: 1, kind: output, shape index: {}]  }
   0x1   :  { %v4_v0 = vld [vmem:[%s28_s0] ss:$0 sm:$0xff] }
   0x2   :  { %5 = vst [vmem:[%s29_s1] sm:$0xff] %v4_v0  ;;  %8 = vst [vmem:[%s29_s1 + $0x8] sm:$0xff] %v4_v0 }

// kernel: tile.29
= control target key start
LH: loop header
LB: loop body
LE: loop exit
PB: predicated region body
PF: predicated region fallthrough
CT: control target
= control target key end

     0   :  { %s133_s10 = smov 120   ;;  %s134_s11 = smov 104   ;;  %vm3_vm0 = vcmask 64512   ;;  %vm9_vm1 = vcmask 1048512   ;;  %vm15_vm2 = vcmask 982912   ;;  %vm21_vm3 = vcmask 917312   ;;  %s209_s0 = inlined_call_operand.vmem [shape: f32[16,8], index: 0, kind: input, shape index: {}]   ;;  %s210_s1 = inlined_call_operand.vmem [shape: f32[1,128], index: 1, kind: output, shape index: {}]  }
   0x1   :  { %v103_v0 = vld [vmem:[%s209_s0 + $0xf] sm:$0x1]   ;;  %v105_v1 = vld [vmem:[%s209_s0 + $0xd] sm:$0x1]   ;;  %v104_v2 = vld [vmem:[%s209_s0 + $0xe] sm:$0x1]  }
   0x2   :  { %7 = vrot.lane.b32.xlu0 %v103_v0, %s133_s10  ;;  %19 = vrot.lane.b32.xlu1 %v105_v1, %s134_s11  ;;  %v106_v3 = vld [vmem:[%s209_s0 + $0xc] sm:$0x1]   ;;  %s135_s16 = smov 112   ;;  %s136_s17 = smov 96   ;;  %v107_v4 = vld [vmem:[%s209_s0 + $0xb] sm:$0x1]  }
   0x3   :  { %v108_v5 = vld [vmem:[%s209_s0 + $0xa] sm:$0x1]   ;;  %v2_v6 = vld [vmem:[%s209_s0] sm:$0x1]   ;;  %s137_s24 = smov 88   ;;  %s138_s25 = smov 80  }
   0x4   :  { %4 = vst.msk [vmem:[#allocation0] sm:$0x1] %vm3_vm0, %v2_v6   ;;  %v109_v7 = vld [vmem:[%s209_s0 + $0x9] sm:$0x1]   ;;  %v110_v8 = vld [vmem:[%s209_s0 + $0x8] sm:$0x1]  }
   0x5   :  { %s139_s30 = smov 72   ;;  %s140_s2 = smov 64   ;;  %v111_v9 = vld [vmem:[%s209_s0 + $0x7] sm:$0x1]   ;;  %v112_v10 = vld [vmem:[%s209_s0 + $0x6] sm:$0x1]  }
   0x6   :  { %13 = vrot.lane.b32.xlu0 %v104_v2, %s135_s16  ;;  %25 = vrot.lane.b32.xlu1 %v106_v3, %s136_s17  ;;  %s141_s7 = smov 56   ;;  %s142_s8 = smov 48   ;;  %v113_v11 = vld [vmem:[%s209_s0 + $0x5] sm:$0x1]   ;;  %v114_v12 = vld [vmem:[%s209_s0 + $0x4] sm:$0x1]  }
   0x7   :  { %s143_s13 = smov 40   ;;  %s144_s14 = smov 32   ;;  %v115_v13 = vld [vmem:[%s209_s0 + $0x3] sm:$0x1]   ;;  %v116_v14 = vld [vmem:[%s209_s0 + $0x2] sm:$0x1]  }
   0x8   :  { %s145_s19 = smov 24   ;;  %s146_s20 = smov 16   ;;  %v117_v15 = vld [vmem:[%s209_s0 + $0x1] sm:$0x1]   ;;  %vm27_vm4 = vcmask 851712   ;;  %vm33_vm5 = vcmask 786112  }
   0x9   :  { %s147_s0 = smov 8   ;;  %vm39_vm6 = vcmask 720512   ;;  %vm45_vm7 = vcmask 654912   ;;  %vm51_vm8 = vcmask 589312   ;;  %vm57_vm9 = vcmask 523712  }
   0xa   :  { %31 = vrot.lane.b32.xlu0 %v107_v4, %s137_s24  ;;  %37 = vrot.lane.b32.xlu1 %v108_v5, %s138_s25  ;;  %vm63_vm10 = vcmask 458112   ;;  %vm69_vm11 = vcmask 392512   ;;  %vm75_vm12 = vcmask 326912   ;;  %vm81_vm13 = vcmask 261312  }
   0xb   :  { %vm87_vm14 = vcmask 195712   ;;  %vm93_vm15 = vcmask 130112  }
   0xe   :  { %43 = vrot.lane.b32.xlu0 %v109_v7, %s139_s30  ;;  %49 = vrot.lane.b32.xlu1 %v110_v8, %s140_s2 }
  0x12   :  { %55 = vrot.lane.b32.xlu0 %v111_v9, %s141_s7  ;;  %61 = vrot.lane.b32.xlu1 %v112_v10, %s142_s8 }
  0x16   :  { %67 = vrot.lane.b32.xlu0 %v113_v11, %s143_s13  ;;  %73 = vrot.lane.b32.xlu1 %v114_v12, %s144_s14 }
  0x1a   :  { %79 = vrot.lane.b32.xlu0 %v115_v13, %s145_s19  ;;  %85 = vrot.lane.b32.xlu1 %v116_v14, %s146_s20 }
  0x1e   :  { %91 = vrot.lane.b32.xlu0 %v117_v15, %s147_s0 }
  0x74   :  { %v8_v16 = vpop.permute.xlu0 %7   ;;  %v20_v17 = vpop.permute.xlu1 %19  }
  0x75   :  { %10 = vst.msk [vmem:[#allocation0] sm:$0x1] %vm9_vm1, %v8_v16  }
  0x78   :  { %v14_v18 = vpop.permute.xlu0 %13   ;;  %v26_v19 = vpop.permute.xlu1 %25  }
  0x79   :  { %16 = vst.msk [vmem:[#allocation0] sm:$0x1] %vm15_vm2, %v14_v18  }
  0x7a   :  { %22 = vst.msk [vmem:[#allocation0] sm:$0x1] %vm21_vm3, %v20_v17  }
  0x7b   :  { %28 = vst.msk [vmem:[#allocation0] sm:$0x1] %vm27_vm4, %v26_v19  }
  0x7c   :  { %v32_v20 = vpop.permute.xlu0 %31   ;;  %v38_v21 = vpop.permute.xlu1 %37  }
  0x7d   :  { %34 = vst.msk [vmem:[#allocation0] sm:$0x1] %vm33_vm5, %v32_v20  }
  0x7e   :  { %40 = vst.msk [vmem:[#allocation0] sm:$0x1] %vm39_vm6, %v38_v21  }
  0x80   :  { %v44_v22 = vpop.permute.xlu0 %43   ;;  %v50_v23 = vpop.permute.xlu1 %49  }
  0x81   :  { %46 = vst.msk [vmem:[#allocation0] sm:$0x1] %vm45_vm7, %v44_v22  }
  0x82   :  { %52 = vst.msk [vmem:[#allocation0] sm:$0x1] %vm51_vm8, %v50_v23  }
  0x84   :  { %v56_v24 = vpop.permute.xlu0 %55   ;;  %v62_v25 = vpop.permute.xlu1 %61  }
  0x85   :  { %58 = vst.msk [vmem:[#allocation0] sm:$0x1] %vm57_vm9, %v56_v24  }
  0x86   :  { %64 = vst.msk [vmem:[#allocation0] sm:$0x1] %vm63_vm10, %v62_v25  }
  0x88   :  { %v68_v26 = vpop.permute.xlu0 %67   ;;  %v74_v27 = vpop.permute.xlu1 %73  }
  0x89   :  { %70 = vst.msk [vmem:[#allocation0] sm:$0x1] %vm69_vm11, %v68_v26  }
  0x8a   :  { %76 = vst.msk [vmem:[#allocation0] sm:$0x1] %vm75_vm12, %v74_v27  }
  0x8c   :  { %v80_v28 = vpop.permute.xlu0 %79   ;;  %v86_v29 = vpop.permute.xlu1 %85  }
  0x8d   :  { %82 = vst.msk [vmem:[#allocation0] sm:$0x1] %vm81_vm13, %v80_v28  }
  0x8e   :  { %88 = vst.msk [vmem:[#allocation0] sm:$0x1] %vm87_vm14, %v86_v29  }
  0x90   :  { %v92_v30 = vpop.permute.xlu0 %91  }
  0x91   :  { %94 = vst.msk [vmem:[#allocation0] sm:$0x1] %vm93_vm15, %v92_v30  }
  0x98   :  { %v99_v31 = vld [vmem:[#allocation0] sm:$0x1] }
  0x99   :  { %102 = vst [vmem:[%s210_s1] sm:$0x1] %v99_v31 }

// kernel: double_conv_forward.3
= control target key start
LH: loop header
LB: loop body
LE: loop exit
PB: predicated region body
PF: predicated region fallthrough
CT: control target
= control target key end

     0   :  { %vm25_vm0 = vcmask 516096   ;;  %v461_v1 = vmov 0.0   ;;  %vm30_vm1 = vcmask 523264   ;;  %s573_s1 = inlined_call_operand.vmem [shape: f32[1,64], index: 1, kind: input, shape index: {}]   ;;  %s574_s2 = inlined_call_operand.vmem [shape: f32[1,64], index: 2, kind: input, shape index: {}]   ;;  %s575_s3 = inlined_call_operand.vmem [shape: bf16[3,64,128], index: 3, kind: input, shape index: {}]   ;;  %s576_s0 = inlined_call_operand.vmem [shape: f32[2,16,64], index: 0, kind: input, shape index: {}]   ;;  %s577_s4 = inlined_call_operand.vmem [shape: f32[2,16,128], index: 4, kind: output, shape index: {0}]   ;;  %s578_s5 = inlined_call_operand.vmem [shape: f32[1,1,128], index: 5, kind: output, shape index: {1}]   ;;  %s579_s6 = inlined_call_operand.vmem [shape: f32[1,1,128], index: 6, kind: output, shape index: {2}]  }
   0x1   :  { %v449_v0 = vld [vmem:[%s575_s3 + $0x38] sm:$0xff]   ;;  %26 = vst.msk [vmem:[#allocation2] sm:$0x1] %vm25_vm0, %v461_v1  ;;  %29 = vst.msk [vmem:[#allocation2 + $0x29] sm:$0x1] %vm25_vm0, %v461_v1  ;;  %v451_v3 = vld [vmem:[%s575_s3 + $0x30] sm:$0xff]  }
   0x2   :  { %27 = vst.msk [vmem:[#allocation2 + $0x18] sm:$0x1] %vm25_vm0, %v461_v1  ;;  %28 = vst.msk [vmem:[#allocation2 + $0x11] sm:$0x1] %vm25_vm0, %v461_v1  ;;  %v450_v2 = vld [vmem:[%s575_s3 + $0x18] sm:$0xff]   ;;  %412 = vmatprep.subr.bf16.mxu0 %v449_v0  ;;  %v452_v4 = vld [vmem:[%s575_s3 + $0x10] sm:$0xff]  }
   0x3   :  { %424 = vmatprep.subr.bf16.mxu1 %v450_v2  ;;  %413 = vmatpush3.bf16.msra.mxu0 %v449_v0  ;;  %v453_v5 = vld [vmem:[%s575_s3 + $0x28] sm:$0xff]   ;;  %v455_v7 = vld [vmem:[%s575_s3 + $0x20] sm:$0xff]   ;;  %v23_v11 = vld [vmem:[%s576_s0 + $0x10] sm:$0xff] }
   0x4   :  { %425 = vmatpush3.bf16.msra.mxu1 %v450_v2  ;;  %414 = vmatprep.subr.bf16.mxu0 %v451_v3  ;;  %v454_v6 = vld [vmem:[%s575_s3 + $0x8] sm:$0xff]   ;;  %v456_v8 = vld [vmem:[%s575_s3] sm:$0xff]   ;;  %v24_v12 = vld [vmem:[%s576_s0 + $0x18] sm:$0xff]  ;;  %33 = vst.msk [vmem:[#allocation2 + $0x19] sm:$0xff] %vm30_vm1, %v23_v11 }
   0x5   :  { %426 = vmatprep.subr.bf16.mxu1 %v452_v4  ;;  %v21_v9 = vld [vmem:[%s576_s0] sm:$0xff]  ;;  %v22_v10 = vld [vmem:[%s576_s0 + $0x8] sm:$0xff]  ;;  %34 = vst.msk [vmem:[#allocation2 + $0x21] sm:$0xff] %vm30_vm1, %v24_v12  ;;  %v457_v13 = vld [vmem:[%s575_s3 + $0x58] sm:$0xff]  }
   0x6   :  { %31 = vst.msk [vmem:[#allocation2 + $0x1] sm:$0xff] %vm30_vm1, %v21_v9  ;;  %32 = vst.msk [vmem:[#allocation2 + $0x9] sm:$0xff] %vm30_vm1, %v22_v10  ;;  %v458_v17 = vld [vmem:[%s575_s3 + $0x50] sm:$0xff]   ;;  %v459_v30 = vld [vmem:[%s575_s3 + $0x48] sm:$0xff]  }
   0x7   :  { %415 = vmatpush3.bf16.msra.mxu0 %v451_v3  ;;  %v460_v31 = vld [vmem:[%s575_s3 + $0x40] sm:$0xff]  }
   0x8   :  { %427 = vmatpush3.bf16.msra.mxu1 %v452_v4  ;;  %416 = vmatprep.subr.bf16.mxu0 %v453_v5 }
   0x9   :  { %428 = vmatprep.subr.bf16.mxu1 %v454_v6 }
   0xb   :  { %417 = vmatpush3.bf16.msra.mxu0 %v453_v5  ;;  %v51_v20 = vld [vmem:[#allocation2 + $0x19] sm:$0xff] }
   0xc   :  { %429 = vmatpush3.bf16.msra.mxu1 %v454_v6  ;;  %418 = vmatprep.subr.bf16.mxu0 %v455_v7  ;;  %v52_v21 = vld [vmem:[#allocation2 + $0x21] sm:$0xff]  ;;  %v37_v24 = vld [vmem:[#allocation2 + $0x18] sm:$0xff] }
   0xd   :  { %430 = vmatprep.subr.bf16.mxu1 %v456_v8  ;;  %v49_v14 = vld [vmem:[#allocation2 + $0x1] sm:$0xff]  ;;  %v50_v15 = vld [vmem:[#allocation2 + $0x9] sm:$0xff]  ;;  %v54_v23 = vpack.c.bf16 %v52_v21, %v51_v20 }
   0xe   :  { %v35_v16 = vld [vmem:[#allocation2] sm:$0xff]  ;;  %v53_v18 = vpack.c.bf16 %v50_v15, %v49_v14  ;;  %v36_v19 = vld [vmem:[#allocation2 + $0x8] sm:$0xff] }
   0xf   :  { %419 = vmatpush3.bf16.msra.mxu0 %v455_v7  ;;  %v39_v22 = vpack.c.bf16 %v36_v19, %v35_v16  ;;  %v38_v25 = vld [vmem:[#allocation2 + $0x20] sm:$0xff]  ;;  %v223_v28 = vld [vmem:[#allocation2 + $0xa] sm:$0xff] }
  0x10   :  { %431 = vmatpush3.bf16.msra.mxu1 %v456_v8  ;;  %436 = vmatprep.subr.bf16.mxu0 %v457_v13  ;;  %v222_v26 = vld [vmem:[#allocation2 + $0x2] sm:$0xff]  ;;  %v40_v27 = vpack.c.bf16 %v38_v25, %v37_v24  ;;  %v224_v32 = vld [vmem:[#allocation2 + $0x1a] sm:$0xff] }
  0x11   :  { %420 = vmatprep.mubr.msk.bf16.mxu0 %vm30_vm1, %v53_v18  ;;  %432 = vmatprep.mubr.msk.bf16.mxu1 %vm30_vm1, %v39_v22  ;;  %v226_v29 = vpack.c.bf16 %v223_v28, %v222_v26  ;;  %v225_v33 = vld [vmem:[#allocation2 + $0x22] sm:$0xff] }
  0x12   :  { %421 = vmatmul.mubr.msk.bf16.vlgmr.msra.gmra.mxu0 %vm30_vm1, %v54_v23  ;;  %v227_v34 = vpack.c.bf16 %v225_v33, %v224_v32 }
  0x13   :  { %433 = vmatmul.mubr.msk.bf16.vlgmr.msra.gmra.mxu1 %vm30_vm1, %v40_v27  ;;  %437 = vmatpush3.bf16.msra.mxu0 %v457_v13 }
  0x14   :  { %438 = vmatprep.subr.bf16.mxu0 %v458_v17  ;;  %444 = vmatprep.mubr.msk.bf16.mxu0 %vm30_vm1, %v226_v29 }
  0x17   :  { %439 = vmatpush3.bf16.msra.mxu0 %v458_v17 }
  0x18   :  { %440 = vmatprep.subr.bf16.mxu0 %v459_v30 }
  0x1b   :  { %441 = vmatpush3.bf16.msra.mxu0 %v459_v30 }
  0x1c   :  { %442 = vmatprep.subr.bf16.mxu0 %v460_v31 }
  0x1f   :  { %443 = vmatpush3.bf16.msra.mxu0 %v460_v31 }
  0x22   :  { %445 = vmatmul.mubr.msk.bf16.vlgmr.msra.gmra.mxu0 %vm30_vm1, %v227_v34 }
  0xd2   :  { %v422_v35 = vpop.f32.mrf.mxu0 }
  0xd3   :  { %v434_v36 = vpop.f32.mrf.mxu1 }
  0xd4   :  { %v128_v37 = vpop.f32.mrf.mxu0  ;;  %v216_v42 = vadd.f32 %v434_v36, %v422_v35 }
  0xd5   :  { %v207_v38 = vpop.f32.mrf.mxu1 }
  0xd6   :  { %v423_v39 = vpop.f32.mrf.mxu0  ;;  %v208_v44 = vadd.f32 %v207_v38, %v128_v37 }
  0xd7   :  { %v435_v40 = vpop.f32.mrf.mxu1 }
  0xd8   :  { %v131_v41 = vpop.f32.mrf.mxu0  ;;  %v219_v48 = vadd.f32 %v435_v40, %v423_v39 }
  0xd9   :  { %v210_v46 = vpop.f32.mrf.mxu1 }
  0xda   :  { %v211_v51 = vadd.f32 %v210_v46, %v131_v41 }
  0xe2   :  { %v446_v43 = vpop.f32.mrf.mxu0 }
  0xe3   :  { %v318_v45 = vadd.f32 %v446_v43, %v216_v42 }
  0xe4   :  { %v301_v47 = vpop.f32.mrf.mxu0 }
  0xe5   :  { %322 = vst [vmem:[%s577_s4 + $0x10] sm:$0xff] %v318_v45  ;;  %v316_v49 = vadd.f32 %v301_v47, %v208_v44  ;;  %v336_v58 = vmul.f32 %v318_v45, %v318_v45 }
  0xe6   :  { %v447_v50 = vpop.f32.mrf.mxu0 }
  0xe7   :  { %320 = vst [vmem:[%s577_s4] sm:$0xff] %v316_v49  ;;  %v319_v52 = vadd.f32 %v447_v50, %v219_v48  ;;  %v334_v55 = vmul.f32 %v316_v49, %v316_v49 }
  0xe8   :  { %v304_v53 = vpop.f32.mrf.mxu0 }
  0xe9   :  { %323 = vst [vmem:[%s577_s4 + $0x18] sm:$0xff] %v319_v52  ;;  %v317_v54 = vadd.f32 %v304_v53, %v211_v51  ;;  %v337_v61 = vmul.f32 %v319_v52, %v319_v52 }
  0xeb   :  { %321 = vst [vmem:[%s577_s4 + $0x8] sm:$0xff] %v317_v54  ;;  %v324_v56 = vadd.f32 %v317_v54, %v316_v49  ;;  %v335_v57 = vmul.f32 %v317_v54, %v317_v54 }
  0xed   :  { %v325_v59 = vadd.f32 %v324_v56, %v318_v45  ;;  %v338_v60 = vadd.f32 %v335_v57, %v334_v55 }
  0xef   :  { %v326_v62 = vadd.f32 %v325_v59, %v319_v52  ;;  %v339_v63 = vadd.f32 %v338_v60, %v336_v58 }
  0xf1   :  { %v327_v0 = vrot.slane %v326_v62, 4  ;;  %v340_v1 = vadd.f32 %v339_v63, %v337_v61 }
  0xf3   :  { %v328_v2 = vadd.f32 %v327_v0, %v326_v62  ;;  %v341_v3 = vrot.slane %v340_v1, 4 }
  0xf5   :  { %v329_v4 = vrot.slane %v328_v2, 2  ;;  %v342_v5 = vadd.f32 %v341_v3, %v340_v1 }
  0xf7   :  { %v330_v6 = vadd.f32 %v329_v4, %v328_v2  ;;  %v343_v7 = vrot.slane %v342_v5, 2 }
  0xf9   :  { %v331_v8 = vrot.slane %v330_v6, 1  ;;  %v344_v9 = vadd.f32 %v343_v7, %v342_v5 }
  0xfb   :  { %v332_v10 = vadd.f32 %v331_v8, %v330_v6  ;;  %v345_v11 = vrot.slane %v344_v9, 1 }
  0xfd   :  { %333 = vst [vmem:[%s578_s5] sm:$0x1] %v332_v10  ;;  %v346_v12 = vadd.f32 %v345_v11, %v344_v9 }
  0xff   :  { %347 = vst [vmem:[%s579_s6] sm:$0x1] %v346_v12 }

// kernel: double_conv_forward.4
= control target key start
LH: loop header
LB: loop body
LE: loop exit
PB: predicated region body
PF: predicated region fallthrough
CT: control target
= control target key end

     0   :  { %v639_v1 = vmov 0.0   ;;  %s783_s3 = inlined_call_operand.vmem [shape: bf16[3,128,128], index: 3, kind: input, shape index: {}]   ;;  %s784_s0 = inlined_call_operand.vmem [shape: f32[2,16,128], index: 0, kind: input, shape index: {}]   ;;  %s785_s1 = inlined_call_operand.vmem [shape: f32[1,128], index: 1, kind: input, shape index: {}]   ;;  %s786_s2 = inlined_call_operand.vmem [shape: f32[1,128], index: 2, kind: input, shape index: {}]   ;;  %s787_s4 = inlined_call_operand.vmem [shape: f32[2,16,128], index: 4, kind: output, shape index: {0}]   ;;  %s788_s5 = inlined_call_operand.vmem [shape: f32[1,1,128], index: 5, kind: output, shape index: {1}]   ;;  %s789_s6 = inlined_call_operand.vmem [shape: f32[1,1,128], index: 6, kind: output, shape index: {2}]  }
   0x1   :  { %v615_v0 = vld [vmem:[%s783_s3 + $0x78] sm:$0xff]   ;;  %55 = vst [vmem:[#allocation2] sm:$0x1] %v639_v1  ;;  %56 = vst [vmem:[#allocation2 + $0x18] sm:$0x1] %v639_v1  ;;  %v617_v3 = vld [vmem:[%s783_s3 + $0x70] sm:$0xff]  }
   0x2   :  { %57 = vst [vmem:[#allocation2 + $0x11] sm:$0x1] %v639_v1  ;;  %58 = vst [vmem:[#allocation2 + $0x29] sm:$0x1] %v639_v1  ;;  %v616_v2 = vld [vmem:[%s783_s3 + $0x38] sm:$0xff]   ;;  %554 = vmatprep.subr.bf16.mxu0 %v615_v0  ;;  %v618_v4 = vld [vmem:[%s783_s3 + $0x30] sm:$0xff]  }
   0x3   :  { %574 = vmatprep.subr.bf16.mxu1 %v616_v2  ;;  %555 = vmatpush3.bf16.msra.mxu0 %v615_v0  ;;  %v619_v5 = vld [vmem:[%s783_s3 + $0x68] sm:$0xff]   ;;  %v621_v7 = vld [vmem:[%s783_s3 + $0x60] sm:$0xff]   ;;  %v623_v9 = vld [vmem:[%s783_s3 + $0x58] sm:$0xff]  }
   0x4   :  { %575 = vmatpush3.bf16.msra.mxu1 %v616_v2  ;;  %556 = vmatprep.subr.bf16.mxu0 %v617_v3  ;;  %v620_v6 = vld [vmem:[%s783_s3 + $0x28] sm:$0xff]   ;;  %v622_v8 = vld [vmem:[%s783_s3 + $0x20] sm:$0xff]   ;;  %v624_v10 = vld [vmem:[%s783_s3 + $0x18] sm:$0xff]  }
   0x5   :  { %576 = vmatprep.subr.bf16.mxu1 %v618_v4  ;;  %v625_v11 = vld [vmem:[%s783_s3 + $0x50] sm:$0xff]   ;;  %v21_v13 = vld [vmem:[%s784_s0] sm:$0xff]  ;;  %v22_v14 = vld [vmem:[%s784_s0 + $0x8] sm:$0xff] }
   0x6   :  { %v626_v12 = vld [vmem:[%s783_s3 + $0x10] sm:$0xff]   ;;  %v466_v15 = vld [vmem:[%s785_s1] ss:$0 sm:$0xff]  ;;  %v24_v20 = vld [vmem:[%s784_s0 + $0x18] sm:$0xff] }
   0x7   :  { %557 = vmatpush3.bf16.msra.mxu0 %v617_v3  ;;  %v32_v16 = vmul.f32 %v466_v15, %v21_v13  ;;  %v33_v17 = vmul.f32 %v466_v15, %v22_v14  ;;  %v467_v18 = vld [vmem:[%s786_s2] ss:$0 sm:$0xff]  ;;  %v23_v19 = vld [vmem:[%s784_s0 + $0x10] sm:$0xff]  ;;  %v35_v22 = vmul.f32 %v466_v15, %v24_v20  ;;  %v627_v23 = vld [vmem:[%s783_s3 + $0x48] sm:$0xff]  }
   0x8   :  { %577 = vmatpush3.bf16.msra.mxu1 %v618_v4  ;;  %558 = vmatprep.subr.bf16.mxu0 %v619_v5  ;;  %v34_v21 = vmul.f32 %v466_v15, %v23_v19  ;;  %v628_v26 = vld [vmem:[%s783_s3 + $0x8] sm:$0xff]   ;;  %v629_v35 = vld [vmem:[%s783_s3 + $0x40] sm:$0xff]   ;;  %v631_v40 = vld [vmem:[%s783_s3 + $0xb8] sm:$0xff]  }
   0x9   :  { %578 = vmatprep.subr.bf16.mxu1 %v620_v6  ;;  %v43_v24 = vadd.f32 %v467_v18, %v32_v16  ;;  %v44_v25 = vadd.f32 %v467_v18, %v33_v17  ;;  %v46_v28 = vadd.f32 %v467_v18, %v35_v22  ;;  %v630_v38 = vld [vmem:[%s783_s3] sm:$0xff]   ;;  %v632_v42 = vld [vmem:[%s783_s3 + $0xb0] sm:$0xff]   ;;  %v633_v52 = vld [vmem:[%s783_s3 + $0xa8] sm:$0xff]  }
   0xa   :  { %v45_v27 = vadd.f32 %v467_v18, %v34_v21  ;;  %v634_v53 = vld [vmem:[%s783_s3 + $0xa0] sm:$0xff]   ;;  %v635_v54 = vld [vmem:[%s783_s3 + $0x98] sm:$0xff]   ;;  %v636_v55 = vld [vmem:[%s783_s3 + $0x90] sm:$0xff]  }
   0xb   :  { %559 = vmatpush3.bf16.msra.mxu0 %v619_v5  ;;  %v47_v29 = vmul.f32 0.01, %v43_v24  ;;  %v48_v30 = vmul.f32 0.01, %v44_v25  ;;  %v50_v32 = vmul.f32 0.01, %v46_v28 }
   0xc   :  { %579 = vmatpush3.bf16.msra.mxu1 %v620_v6  ;;  %560 = vmatprep.subr.bf16.mxu0 %v621_v7  ;;  %v49_v31 = vmul.f32 0.01, %v45_v27  ;;  %v637_v56 = vld [vmem:[%s783_s3 + $0x88] sm:$0xff]   ;;  %v638_v57 = vld [vmem:[%s783_s3 + $0x80] sm:$0xff]  }
   0xd   :  { %580 = vmatprep.subr.bf16.mxu1 %v622_v8  ;;  %v51_v33 = vmax.f32 %v43_v24, %v47_v29  ;;  %v52_v34 = vmax.f32 %v44_v25, %v48_v30  ;;  %v54_v37 = vmax.f32 %v46_v28, %v50_v32 }
   0xe   :  { %v53_v36 = vmax.f32 %v45_v27, %v49_v31 }
   0xf   :  { %561 = vmatpush3.bf16.msra.mxu0 %v621_v7  ;;  %59 = vst [vmem:[#allocation2 + $0x1] sm:$0xff] %v51_v33  ;;  %60 = vst [vmem:[#allocation2 + $0x9] sm:$0xff] %v52_v34  ;;  %v89_v39 = vpack.c.bf16 %v52_v34, %v51_v33 }
  0x10   :  { %581 = vmatpush3.bf16.msra.mxu1 %v622_v8  ;;  %562 = vmatprep.subr.bf16.mxu0 %v623_v9  ;;  %61 = vst [vmem:[#allocation2 + $0x19] sm:$0xff] %v53_v36  ;;  %62 = vst [vmem:[#allocation2 + $0x21] sm:$0xff] %v54_v37  ;;  %v90_v41 = vpack.c.bf16 %v54_v37, %v53_v36 }
  0x11   :  { %582 = vmatprep.subr.bf16.mxu1 %v624_v10  ;;  %570 = vmatprep.mubr.bf16.mxu0 %v89_v39 }
  0x13   :  { %563 = vmatpush3.bf16.msra.mxu0 %v623_v9 }
  0x14   :  { %583 = vmatpush3.bf16.msra.mxu1 %v624_v10  ;;  %564 = vmatprep.subr.bf16.mxu0 %v625_v11 }
  0x15   :  { %584 = vmatprep.subr.bf16.mxu1 %v626_v12 }
  0x16   :  { %v63_v43 = vld [vmem:[#allocation2] sm:$0xff]  ;;  %v64_v44 = vld [vmem:[#allocation2 + $0x8] sm:$0xff] }
  0x17   :  { %565 = vmatpush3.bf16.msra.mxu0 %v625_v11  ;;  %v302_v45 = vld [vmem:[#allocation2 + $0x2] sm:$0xff]  ;;  %v67_v46 = vpack.c.bf16 %v64_v44, %v63_v43  ;;  %v65_v47 = vld [vmem:[#allocation2 + $0x18] sm:$0xff]  ;;  %v303_v49 = vld [vmem:[#allocation2 + $0xa] sm:$0xff] }
  0x18   :  { %585 = vmatpush3.bf16.msra.mxu1 %v626_v12  ;;  %566 = vmatprep.subr.bf16.mxu0 %v627_v23  ;;  %v66_v48 = vld [vmem:[#allocation2 + $0x20] sm:$0xff]  ;;  %v306_v51 = vpack.c.bf16 %v303_v49, %v302_v45 }
  0x19   :  { %586 = vmatprep.subr.bf16.mxu1 %v628_v26  ;;  %v68_v50 = vpack.c.bf16 %v66_v48, %v65_v47  ;;  %590 = vmatprep.mubr.bf16.mxu1 %v67_v46  ;;  %v304_v58 = vld [vmem:[#allocation2 + $0x1a] sm:$0xff]  ;;  %v305_v59 = vld [vmem:[#allocation2 + $0x22] sm:$0xff] }
  0x1a   :  { %v307_v60 = vpack.c.bf16 %v305_v59, %v304_v58 }
  0x1b   :  { %567 = vmatpush3.bf16.msra.mxu0 %v627_v23 }
  0x1c   :  { %587 = vmatpush3.bf16.msra.mxu1 %v628_v26  ;;  %568 = vmatprep.subr.bf16.mxu0 %v629_v35 }
  0x1d   :  { %588 = vmatprep.subr.bf16.mxu1 %v630_v38 }
  0x1f   :  { %569 = vmatpush3.bf16.msra.mxu0 %v629_v35 }
  0x20   :  { %589 = vmatpush3.bf16.msra.mxu1 %v630_v38  ;;  %594 = vmatprep.subr.bf16.mxu0 %v631_v40 }
  0x22   :  { %571 = vmatmul.mubr.bf16.vlgmr.msra.gmra.mxu0 %v90_v41 }
  0x23   :  { %595 = vmatpush3.bf16.msra.mxu0 %v631_v40  ;;  %591 = vmatmul.mubr.bf16.vlgmr.msra.gmra.mxu1 %v68_v50 }
  0x24   :  { %596 = vmatprep.subr.bf16.mxu0 %v632_v42  ;;  %610 = vmatprep.mubr.bf16.mxu0 %v306_v51 }
  0x27   :  { %597 = vmatpush3.bf16.msra.mxu0 %v632_v42 }
  0x28   :  { %598 = vmatprep.subr.bf16.mxu0 %v633_v52 }
  0x2b   :  { %599 = vmatpush3.bf16.msra.mxu0 %v633_v52 }
  0x2c   :  { %600 = vmatprep.subr.bf16.mxu0 %v634_v53 }
  0x2f   :  { %601 = vmatpush3.bf16.msra.mxu0 %v634_v53 }
  0x30   :  { %602 = vmatprep.subr.bf16.mxu0 %v635_v54 }
  0x33   :  { %603 = vmatpush3.bf16.msra.mxu0 %v635_v54 }
  0x34   :  { %604 = vmatprep.subr.bf16.mxu0 %v636_v55 }
  0x37   :  { %605 = vmatpush3.bf16.msra.mxu0 %v636_v55 }
  0x38   :  { %606 = vmatprep.subr.bf16.mxu0 %v637_v56 }
  0x3b   :  { %607 = vmatpush3.bf16.msra.mxu0 %v637_v56 }
  0x3c   :  { %608 = vmatprep.subr.bf16.mxu0 %v638_v57 }
  0x3f   :  { %609 = vmatpush3.bf16.msra.mxu0 %v638_v57 }
  0x42   :  { %611 = vmatmul.mubr.bf16.vlgmr.msra.gmra.mxu0 %v307_v60 }
  0xe2   :  { %v572_v61 = vpop.f32.mrf.mxu0 }
  0xe3   :  { %v592_v62 = vpop.f32.mrf.mxu1 }
  0xe4   :  { %v190_v63 = vpop.f32.mrf.mxu0  ;;  %v296_v4 = vadd.f32 %v592_v62, %v572_v61 }
  0xe5   :  { %v287_v0 = vpop.f32.mrf.mxu1 }
  0xe6   :  { %v573_v1 = vpop.f32.mrf.mxu0  ;;  %v288_v6 = vadd.f32 %v287_v0, %v190_v63 }
  0xe7   :  { %v593_v2 = vpop.f32.mrf.mxu1 }
  0xe8   :  { %v193_v3 = vpop.f32.mrf.mxu0  ;;  %v299_v10 = vadd.f32 %v593_v2, %v573_v1 }
  0xe9   :  { %v290_v8 = vpop.f32.mrf.mxu1 }
  0xea   :  { %v291_v13 = vadd.f32 %v290_v8, %v193_v3 }
 0x102   :  { %v612_v5 = vpop.f32.mrf.mxu0 }
 0x103   :  { %v424_v7 = vadd.f32 %v612_v5, %v296_v4 }
 0x104   :  { %v407_v9 = vpop.f32.mrf.mxu0 }
 0x105   :  { %428 = vst [vmem:[%s787_s4 + $0x10] sm:$0xff] %v424_v7  ;;  %v422_v11 = vadd.f32 %v407_v9, %v288_v6  ;;  %v442_v20 = vmul.f32 %v424_v7, %v424_v7 }
 0x106   :  { %v613_v12 = vpop.f32.mrf.mxu0 }
 0x107   :  { %426 = vst [vmem:[%s787_s4] sm:$0xff] %v422_v11  ;;  %v425_v14 = vadd.f32 %v613_v12, %v299_v10  ;;  %v440_v17 = vmul.f32 %v422_v11, %v422_v11 }
 0x108   :  { %v410_v15 = vpop.f32.mrf.mxu0 }
 0x109   :  { %429 = vst [vmem:[%s787_s4 + $0x18] sm:$0xff] %v425_v14  ;;  %v423_v16 = vadd.f32 %v410_v15, %v291_v13  ;;  %v443_v23 = vmul.f32 %v425_v14, %v425_v14 }
 0x10b   :  { %427 = vst [vmem:[%s787_s4 + $0x8] sm:$0xff] %v423_v16  ;;  %v430_v18 = vadd.f32 %v423_v16, %v422_v11  ;;  %v441_v19 = vmul.f32 %v423_v16, %v423_v16 }
 0x10d   :  { %v431_v21 = vadd.f32 %v430_v18, %v424_v7  ;;  %v444_v22 = vadd.f32 %v441_v19, %v440_v17 }
 0x10f   :  { %v432_v24 = vadd.f32 %v431_v21, %v425_v14  ;;  %v445_v25 = vadd.f32 %v444_v22, %v442_v20 }
 0x111   :  { %v433_v26 = vrot.slane %v432_v24, 4  ;;  %v446_v27 = vadd.f32 %v445_v25, %v443_v23 }
 0x113   :  { %v434_v28 = vadd.f32 %v433_v26, %v432_v24  ;;  %v447_v29 = vrot.slane %v446_v27, 4 }
 0x115   :  { %v435_v30 = vrot.slane %v434_v28, 2  ;;  %v448_v31 = vadd.f32 %v447_v29, %v446_v27 }
 0x117   :  { %v436_v32 = vadd.f32 %v435_v30, %v434_v28  ;;  %v449_v33 = vrot.slane %v448_v31, 2 }
 0x119   :  { %v437_v34 = vrot.slane %v436_v32, 1  ;;  %v450_v35 = vadd.f32 %v449_v33, %v448_v31 }
 0x11b   :  { %v438_v36 = vadd.f32 %v437_v34, %v436_v32  ;;  %v451_v37 = vrot.slane %v450_v35, 1 }
 0x11d   :  { %439 = vst [vmem:[%s788_s5] sm:$0x1] %v438_v36  ;;  %v452_v38 = vadd.f32 %v451_v37, %v450_v35 }
 0x11f   :  { %453 = vst [vmem:[%s789_s6] sm:$0x1] %v452_v38 }

// kernel: double_conv_forward.5
= control target key start
LH: loop header
LB: loop body
LE: loop exit
PB: predicated region body
PF: predicated region fallthrough
CT: control target
= control target key end

     0   :  { %s108_s0 = inlined_call_operand.vmem [shape: f32[2,16,128], index: 0, kind: input, shape index: {}]   ;;  %s109_s1 = inlined_call_operand.vmem [shape: f32[1,128], index: 1, kind: input, shape index: {}]   ;;  %s110_s2 = inlined_call_operand.vmem [shape: f32[1,128], index: 2, kind: input, shape index: {}]   ;;  %s111_s3 = inlined_call_operand.vmem [shape: f32[2,16,128], index: 3, kind: output, shape index: {}]  }
   0x1   :  { %v14_v0 = vld [vmem:[%s108_s0] sm:$0xff]  ;;  %v15_v4 = vld [vmem:[%s108_s0 + $0x8] sm:$0xff]  ;;  %v16_v5 = vld [vmem:[%s108_s0 + $0x10] sm:$0xff] }
   0x2   :  { %v56_v1 = vld [vmem:[%s109_s1] ss:$0 sm:$0xff]  ;;  %v17_v6 = vld [vmem:[%s108_s0 + $0x18] sm:$0xff] }
   0x3   :  { %v57_v2 = vld [vmem:[%s110_s2] ss:$0 sm:$0xff]  ;;  %v25_v3 = vmul.f32 %v56_v1, %v14_v0  ;;  %v26_v7 = vmul.f32 %v56_v1, %v15_v4  ;;  %v27_v8 = vmul.f32 %v56_v1, %v16_v5  ;;  %v28_v9 = vmul.f32 %v56_v1, %v17_v6 }
   0x5   :  { %v36_v10 = vadd.f32 %v57_v2, %v25_v3  ;;  %v37_v11 = vadd.f32 %v57_v2, %v26_v7  ;;  %v38_v12 = vadd.f32 %v57_v2, %v27_v8  ;;  %v39_v13 = vadd.f32 %v57_v2, %v28_v9 }
   0x7   :  { %v40_v14 = vmul.f32 0.01, %v36_v10  ;;  %v41_v15 = vmul.f32 0.01, %v37_v11  ;;  %v42_v16 = vmul.f32 0.01, %v38_v12 }
   0x8   :  { %v43_v17 = vmul.f32 0.01, %v39_v13 }
   0x9   :  { %v44_v18 = vmax.f32 %v36_v10, %v40_v14  ;;  %v45_v19 = vmax.f32 %v37_v11, %v41_v15  ;;  %v46_v20 = vmax.f32 %v38_v12, %v42_v16 }
   0xa   :  { %v47_v21 = vmax.f32 %v39_v13, %v43_v17 }
   0xb   :  { %48 = vst [vmem:[%s111_s3] sm:$0xff] %v44_v18  ;;  %49 = vst [vmem:[%s111_s3 + $0x8] sm:$0xff] %v45_v19 }
   0xc   :  { %50 = vst [vmem:[%s111_s3 + $0x10] sm:$0xff] %v46_v20  ;;  %51 = vst [vmem:[%s111_s3 + $0x18] sm:$0xff] %v47_v21 }

</bundles_post_ra>
